<compile_context>
chip_gen: v6e
topology: v6e:2x2x1
jax: 0.10.0
libtpu: 0.0.40
codegen_flags: <defaults>
</compile_context>

<pallas_src>
import functools

import jax
import jax.numpy as jnp
from jax.experimental import pallas as pl
from jax.experimental.pallas import tpu as pltpu

EPS = 1e-5
_MIN_GRID_STEPS = 8          # >= 4 iterations per TensorCore on v7x megacore
_MIN_BLOCK_BYTES = 1 << 20   # ...but never shrink blocks below ~1 MiB for it


# --------------------------------------------------------------------------
# In-kernel helpers
# --------------------------------------------------------------------------
def _moments(x, axes):
    """Biased mean/var via sum & sum-of-squares (no (x - mean) block temp)."""
    count = 1
    for a in axes:
        count *= x.shape[a]
    inv_n = 1.0 / float(count)
    mean = jnp.sum(x, axis=axes, keepdims=True) * inv_n
    ex2 = jnp.sum(x * x, axis=axes, keepdims=True) * inv_n
    var = jnp.maximum(ex2 - mean * mean, 0.0)   # guard tiny negative cancellation
    return mean, var


def _affine_fold(mean, var, gamma, beta):
    """Fold normalization + affine into out = x * scale + shift."""
    scale = gamma * jax.lax.rsqrt(var + EPS)    # EUP rsqrt (free slot)
    shift = beta - mean * scale
    return scale, shift


# --------------------------------------------------------------------------
# Kernels
# --------------------------------------------------------------------------
def _ibn_fused_kernel(x_ref, g_ref, b_ref, o_ref, *, tc, half1, n_ctiles):
    """One (N, tc, HW) channel tile per grid step; IN/BN boundary in-kernel."""
    pid = pl.program_id(0)
    x = x_ref[...].astype(jnp.float32)                  # (N, tc, HW)
    c_start = pid * tc                                  # global channel offset

    if n_ctiles == 1:
        gamma = g_ref[...]                              # (tc, 1) == (C, 1)
        beta = b_ref[...]
    else:
        c0 = pl.multiple_of(c_start, 8)                 # tc is a multiple of 8
        gamma = g_ref[pl.ds(c0, tc), :]                 # (tc, 1)
        beta = b_ref[pl.ds(c0, tc), :]

    n_in_full = half1 // tc                             # tiles fully IN
    n_bn_start = -(-half1 // tc)                        # first fully-BN tile
    has_mixed = (half1 % tc) != 0

    def _write(scale, shift):
        o_ref[...] = (x * scale + shift).astype(o_ref.dtype)

    if n_in_full > 0:
        @pl.when(pid < n_in_full)
        def _pure_in():
            mean, var = _moments(x, (2,))               # per (n, c) over HW
            _write(*_affine_fold(mean, var, gamma, beta))

    if n_bn_start < n_ctiles:
        @pl.when(pid >= n_bn_start)
        def _pure_bn():
            mean, var = _moments(x, (0, 2))             # per c over (N, HW)
            _write(*_affine_fold(mean, var, gamma, beta))

    if has_mixed:                                       # at most one boundary tile
        @pl.when(pid == n_in_full)
        def _mixed():
            m_in, v_in = _moments(x, (2,))
            m_bn, v_bn = _moments(x, (0, 2))
            s_in, h_in = _affine_fold(m_in, v_in, gamma, beta)
            s_bn, h_bn = _affine_fold(m_bn, v_bn, gamma, beta)
            cidx = c_start + jax.lax.broadcasted_iota(jnp.int32, (1, tc, 1), 1)
            is_in = cidx < half1
            _write(jnp.where(is_in, s_in, s_bn), jnp.where(is_in, h_in, h_bn))


def _ibn_ntile_kernel(x_ref, g_ref, b_ref, bnsc_ref, bnsh_ref, o_ref,
                      *, tc, half1, n_ctiles):
    """Large-activation path: batch is tiled too; BN scale/shift precomputed."""
    pid = pl.program_id(0)                              # channel-tile index
    x = x_ref[...].astype(jnp.float32)                  # (tn, tc, HW)
    c_start = pid * tc

    if n_ctiles == 1:
        gamma, beta = g_ref[...], b_ref[...]
        bn_scale, bn_shift = bnsc_ref[...], bnsh_ref[...]
    else:
        c0 = pl.multiple_of(c_start, 8)
        gamma = g_ref[pl.ds(c0, tc), :]
        beta = b_ref[pl.ds(c0, tc), :]
        bn_scale = bnsc_ref[pl.ds(c0, tc), :]
        bn_shift = bnsh_ref[pl.ds(c0, tc), :]

    n_in_full = half1 // tc
    n_bn_start = -(-half1 // tc)
    has_mixed = (half1 % tc) != 0

    def _write(scale, shift):
        o_ref[...] = (x * scale + shift).astype(o_ref.dtype)

    if n_in_full > 0:
        @pl.when(pid < n_in_full)
        def _pure_in():
            mean, var = _moments(x, (2,))               # per (n, c) over HW
            _write(*_affine_fold(mean, var, gamma, beta))

    if n_bn_start < n_ctiles:
        @pl.when(pid >= n_bn_start)
        def _pure_bn():
            _write(bn_scale, bn_shift)                  # pure elementwise pass

    if has_mixed:
        @pl.when(pid == n_in_full)
        def _mixed():
            m_in, v_in = _moments(x, (2,))
            s_in, h_in = _affine_fold(m_in, v_in, gamma, beta)
            cidx = c_start + jax.lax.broadcasted_iota(jnp.int32, (1, tc, 1), 1)
            is_in = cidx < half1
            _write(jnp.where(is_in, s_in, bn_scale),
                   jnp.where(is_in, h_in, bn_shift))


# --------------------------------------------------------------------------
# Budgets and tile selection
# --------------------------------------------------------------------------
def _vmem_limit_bytes():
    phys = None
    try:
        info = pltpu.get_tpu_info()
        phys = getattr(info, "vmem_capacity_bytes", None)
    except Exception:
        phys = None
    if phys is None:
        phys = 64 * 1024 * 1024                 # conservative (v7x-sized)
    if phys >= 96 * 1024 * 1024:                # v5e / v6e class (128 MiB VMEM)
        return 96 * 1024 * 1024
    return 48 * 1024 * 1024                     # v7x class (64 MiB VMEM)


def _block_footprint(n_elems, in_bytes, out_bytes):
    # 2x double-buffered input + output blocks, plus ~2 block-sized f32 temps
    # (upcast / staged epilogue) — models bf16 inputs correctly too.
    return 2 * n_elems * (in_bytes + out_bytes) + 2 * n_elems * 4


def _channel_tile_candidates(C, in_bytes):
    step = 8 if in_bytes >= 4 else 16           # bf16 packs 16 sublanes / vreg
    cands = [t for t in range(step, C + 1, step) if C % t == 0]
    if C not in cands:
        cands.append(C)                         # full-dim block always legal
    return sorted(cands)


def _pick_fused_tile(C, N, HW, in_bytes, out_bytes, usable):
    cands = _channel_tile_candidates(C, in_bytes)
    fitting = [t for t in cands
               if _block_footprint(N * t * HW, in_bytes, out_bytes) <= usable]
    if not fitting:
        return None
    # Megacore heuristic: prefer >= _MIN_GRID_STEPS grid steps as long as the
    # block stays >= _MIN_BLOCK_BYTES; otherwise take the largest fitting tile.
    good = [t for t in fitting
            if (C // t) >= _MIN_GRID_STEPS
            and N * t * HW * in_bytes >= _MIN_BLOCK_BYTES]
    return max(good) if good else max(fitting)


def _pick_ntile(C, N, HW, in_bytes, out_bytes, usable):
    c_cands = _channel_tile_candidates(C, in_bytes)
    n_cands = [t for t in range(1, N + 1) if N % t == 0]
    best = None
    for tcc in c_cands:
        for tn in n_cands:
            n_elems = tn * tcc * HW
            if _block_footprint(n_elems, in_bytes, out_bytes) <= usable:
                if best is None or n_elems > best[2]:
                    best = (tcc, tn, n_elems)
    if best is None:
        # TODO(synk): tile HW with partial-sum accumulators if even a single
        # (1, tc_min, HW) block overflows VMEM (enormous spatial maps).
        return min(c_cands), 1
    return best[0], best[1]


# --------------------------------------------------------------------------
# Wrapper
# --------------------------------------------------------------------------
def ibn_forward(x, gamma_in, beta_in, gamma_bn, beta_bn, *, max_block_bytes=None):
    """IBN forward (training-mode BN stats). x: (N, C, H, W) -> (N, C, H, W)."""
    N, C, H, W = x.shape
    HW = H * W
    half1 = int(gamma_in.shape[0])
    half2 = int(gamma_bn.shape[0])
    assert half1 + half2 == C

    vmem_limit = _vmem_limit_bytes()
    usable = int(vmem_limit * 0.85)
    if max_block_bytes is not None:             # test hook / external cap
        usable = min(usable, int(max_block_bytes))

    in_bytes = x.dtype.itemsize
    out_bytes = in_bytes

    x3 = x.reshape(N, C, HW)
    gamma_full = jnp.concatenate([gamma_in, gamma_bn]).astype(jnp.float32)
    beta_full = jnp.concatenate([beta_in, beta_bn]).astype(jnp.float32)
    gamma_full = gamma_full.reshape(C, 1)
    beta_full = beta_full.reshape(C, 1)

    # ----- Fused single-read / single-write path -----
    tc = _pick_fused_tile(C, N, HW, in_bytes, out_bytes, usable)
    if tc is not None:
        n_ctiles = C // tc
        kernel = functools.partial(_ibn_fused_kernel,
                                   tc=tc, half1=half1, n_ctiles=n_ctiles)
        out3 = pl.pallas_call(
            kernel,
            out_shape=jax.ShapeDtypeStruct((N, C, HW), x.dtype),
            grid_spec=pltpu.PrefetchScalarGridSpec(
                num_scalar_prefetch=0,
                grid=(n_ctiles,),
                in_specs=[
                    pl.BlockSpec((N, tc, HW), lambda i: (0, i, 0)),
                    pl.BlockSpec((C, 1), lambda i: (0, 0)),   # whole gamma: 1 DMA
                    pl.BlockSpec((C, 1), lambda i: (0, 0)),   # whole beta:  1 DMA
                ],
                out_specs=pl.BlockSpec((N, tc, HW), lambda i: (0, i, 0)),
            ),
            compiler_params=pltpu.CompilerParams(
                dimension_semantics=("parallel",),
                vmem_limit_bytes=vmem_limit,
            ),
        )(x3, gamma_full, beta_full)
        return out3.reshape(N, C, H, W)

    # ----- Large-activation path: a full (N, tc, HW) slab does not fit VMEM -----
    # BatchNorm needs all of N, so precompute per-channel scale/shift for the BN
    # half with one streamed XLA reduction (slice fuses into the reduce; no
    # materialized half, no concat), then one Pallas pass tiled over (C, N).
    x_bn = x3[:, half1:, :].astype(jnp.float32)
    m_bn = jnp.mean(x_bn, axis=(0, 2))
    v_bn = jnp.maximum(jnp.mean(x_bn * x_bn, axis=(0, 2)) - m_bn * m_bn, 0.0)
    sc_bn = gamma_bn.astype(jnp.float32) * jax.lax.rsqrt(v_bn + EPS)
    sh_bn = beta_bn.astype(jnp.float32) - m_bn * sc_bn
    zeros_in = jnp.zeros((half1,), jnp.float32)
    bn_scale_full = jnp.concatenate([zeros_in, sc_bn]).reshape(C, 1)
    bn_shift_full = jnp.concatenate([zeros_in, sh_bn]).reshape(C, 1)

    tc2, tn = _pick_ntile(C, N, HW, in_bytes, out_bytes, usable)
    n_ctiles = C // tc2
    kernel = functools.partial(_ibn_ntile_kernel,
                               tc=tc2, half1=half1, n_ctiles=n_ctiles)
    out3 = pl.pallas_call(
        kernel,
        out_shape=jax.ShapeDtypeStruct((N, C, HW), x.dtype),
        grid_spec=pltpu.PrefetchScalarGridSpec(
            num_scalar_prefetch=0,
            grid=(n_ctiles, N // tn),
            in_specs=[
                pl.BlockSpec((tn, tc2, HW), lambda i, j: (j, i, 0)),
                pl.BlockSpec((C, 1), lambda i, j: (0, 0)),
                pl.BlockSpec((C, 1), lambda i, j: (0, 0)),
                pl.BlockSpec((C, 1), lambda i, j: (0, 0)),
                pl.BlockSpec((C, 1), lambda i, j: (0, 0)),
            ],
            out_specs=pl.BlockSpec((tn, tc2, HW), lambda i, j: (j, i, 0)),
        ),
        compiler_params=pltpu.CompilerParams(
            dimension_semantics=("parallel", "parallel"),
            vmem_limit_bytes=vmem_limit,
        ),
    )(x3, gamma_full, beta_full, bn_scale_full, bn_shift_full)
    return out3.reshape(N, C, H, W)


# --------------------------------------------------------------------------
# Pure-JAX reference (mirrors the PyTorch IBN forward)
# --------------------------------------------------------------------------
def _ibn_reference(x, gamma_in, beta_in, gamma_bn, beta_bn):
    half1 = gamma_in.shape[0]
    x_in = x[:, :half1]
    x_bn = x[:, half1:]

    m_in = jnp.mean(x_in, axis=(2, 3), keepdims=True)
    v_in = jnp.mean((x_in - m_in) ** 2, axis=(2, 3), keepdims=True)
    y_in = (x_in - m_in) / jnp.sqrt(v_in + EPS)
    y_in = y_in * gamma_in[None, :, None, None] + beta_in[None, :, None, None]

    m_bn = jnp.mean(x_bn, axis=(0, 2, 3), keepdims=True)
    v_bn = jnp.mean((x_bn - m_bn) ** 2, axis=(0, 2, 3), keepdims=True)
    y_bn = (x_bn - m_bn) / jnp.sqrt(v_bn + EPS)
    y_bn = y_bn * gamma_bn[None, :, None, None] + beta_bn[None, :, None, None]

    return jnp.concatenate([y_in, y_bn], axis=1)


def _run_case(key, N, C, H, W, max_block_bytes=None):
    half1 = C // 2
    half2 = C - half1
    kx, k1, k2, k3, k4 = jax.random.split(key, 5)
    x = jax.random.normal(kx, (N, C, H, W), dtype=jnp.float32)
    gamma_in = 1.0 + 0.1 * jax.random.normal(k1, (half1,), dtype=jnp.float32)
    beta_in = 0.1 * jax.random.normal(k2, (half1,), dtype=jnp.float32)
    gamma_bn = 1.0 + 0.1 * jax.random.normal(k3, (half2,), dtype=jnp.float32)
    beta_bn = 0.1 * jax.random.normal(k4, (half2,), dtype=jnp.float32)

    out = ibn_forward(x, gamma_in, beta_in, gamma_bn, beta_bn,
                      max_block_bytes=max_block_bytes)
    out = jax.block_until_ready(out)

    ref = _ibn_reference(x, gamma_in, beta_in, gamma_bn, beta_bn)
    assert out.shape == (N, C, H, W)
    assert jnp.allclose(out, ref, atol=2e-4, rtol=1e-4), (
        f"mismatch vs reference for shape {(N, C, H, W)} "
        f"(max_block_bytes={max_block_bytes})"
    )


if __name__ == "__main__":
    key = jax.random.PRNGKey(0)
    keys = jax.random.split(key, 5)

    # Module-spec small shape (half=2): fused path, single mixed IN/BN tile.
    _run_case(keys[0], N=2, C=4, H=16, W=16)
    # Wider channels: fused path, whole C in one tile (mixed branch).
    _run_case(keys[1], N=2, C=32, H=16, W=16)
    # Cap block budget -> tc=8 fused path with pure-IN and pure-BN tiles.
    _run_case(keys[2], N=2, C=32, H=16, W=16, max_block_bytes=160 * 1024)
    # Force the large-activation (batch-tiled) path, pure tiles.
    _run_case(keys[3], N=2, C=32, H=16, W=16, max_block_bytes=64 * 1024)
    # Force the large-activation path with a mixed IN/BN boundary tile.
    _run_case(keys[4], N=2, C=4, H=16, W=16, max_block_bytes=32 * 1024)

    print("KERNEL_OK")
</pallas_src>

<mosaic_0001>
module attributes {stable_mosaic.version = 11 : i64} {
  func.func @_ibn_fused_kernel(%arg0: i32, %arg1: memref<2x4x256xf32, #tpu.memory_space<vmem>>, %arg2: memref<4x1xf32, #tpu.memory_space<vmem>>, %arg3: memref<4x1xf32, #tpu.memory_space<vmem>>, %arg4: memref<2x4x256xf32, #tpu.memory_space<vmem>>) attributes {dimension_semantics = [#tpu.dimension_semantics<parallel>], iteration_bounds = array<i64: 1>, scalar_prefetch = 0 : i64, scratch_operands = 0 : i64, tpu.core_type = #tpu.core_type<tc>, window_params = [{transform_indices = @transform_0, window_bounds = array<i64: 2, 4, 256>}, {pipeline_mode = #tpu.pipeline_mode<synchronous>, transform_indices = @transform_1, window_bounds = array<i64: 4, 1>}, {pipeline_mode = #tpu.pipeline_mode<synchronous>, transform_indices = @transform_2, window_bounds = array<i64: 4, 1>}, {transform_indices = @transform_3, window_bounds = array<i64: 2, 4, 256>}]} {
    %c0 = arith.constant 0 : index
    %c0_0 = arith.constant 0 : index
    %c0_1 = arith.constant 0 : index
    %0 = vector.load %arg1[%c0, %c0_0, %c0_1] : memref<2x4x256xf32, #tpu.memory_space<vmem>>, vector<2x4x256xf32>
    %c4_i32 = arith.constant 4 : i32
    %1 = arith.muli %arg0, %c4_i32 : i32
    %c0_2 = arith.constant 0 : index
    %c0_3 = arith.constant 0 : index
    %2 = vector.load %arg2[%c0_2, %c0_3] : memref<4x1xf32, #tpu.memory_space<vmem>>, vector<4x1xf32>
    %c0_4 = arith.constant 0 : index
    %c0_5 = arith.constant 0 : index
    %3 = vector.load %arg3[%c0_4, %c0_5] : memref<4x1xf32, #tpu.memory_space<vmem>>, vector<4x1xf32>
    %c0_i32 = arith.constant 0 : i32
    %4 = arith.cmpi eq, %arg0, %c0_i32 : i32
    %5 = arith.extui %4 : i1 to i32
    %c0_i32_6 = arith.constant 0 : i32
    %6 = arith.cmpi ne, %5, %c0_i32_6 : i32
    scf.if %6 {
      %cst = arith.constant dense<0.000000e+00> : vector<2x4xf32>
      %7 = vector.multi_reduction <add>, %0, %cst [2] : vector<2x4x256xf32> to vector<2x4xf32>
      %8 = vector.shape_cast %7 : vector<2x4xf32> to vector<2x4x1xf32>
      %cst_7 = arith.constant 3.906250e-03 : f32
      %9 = vector.broadcast %cst_7 : f32 to vector<2x4x1xf32>
      %10 = arith.mulf %8, %9 : vector<2x4x1xf32>
      %11 = arith.mulf %0, %0 : vector<2x4x256xf32>
      %cst_8 = arith.constant dense<0.000000e+00> : vector<2x4xf32>
      %12 = vector.multi_reduction <add>, %11, %cst_8 [2] : vector<2x4x256xf32> to vector<2x4xf32>
      %13 = vector.shape_cast %12 : vector<2x4xf32> to vector<2x4x1xf32>
      %cst_9 = arith.constant 3.906250e-03 : f32
      %14 = vector.broadcast %cst_9 : f32 to vector<2x4x1xf32>
      %15 = arith.mulf %13, %14 : vector<2x4x1xf32>
      %16 = arith.mulf %10, %10 : vector<2x4x1xf32>
      %17 = arith.subf %15, %16 : vector<2x4x1xf32>
      %cst_10 = arith.constant 0.000000e+00 : f32
      %18 = vector.broadcast %cst_10 : f32 to vector<2x4x1xf32>
      %19 = arith.maximumf %17, %18 : vector<2x4x1xf32>
      %cst_11 = arith.constant dense<0.000000e+00> : vector<4xf32>
      %20 = vector.multi_reduction <add>, %0, %cst_11 [0, 2] : vector<2x4x256xf32> to vector<4xf32>
      %21 = vector.shape_cast %20 : vector<4xf32> to vector<1x4x1xf32>
      %cst_12 = arith.constant 0.001953125 : f32
      %22 = vector.broadcast %cst_12 : f32 to vector<1x4x1xf32>
      %23 = arith.mulf %21, %22 : vector<1x4x1xf32>
      %24 = arith.mulf %0, %0 : vector<2x4x256xf32>
      %cst_13 = arith.constant dense<0.000000e+00> : vector<4xf32>
      %25 = vector.multi_reduction <add>, %24, %cst_13 [0, 2] : vector<2x4x256xf32> to vector<4xf32>
      %26 = vector.shape_cast %25 : vector<4xf32> to vector<1x4x1xf32>
      %cst_14 = arith.constant 0.001953125 : f32
      %27 = vector.broadcast %cst_14 : f32 to vector<1x4x1xf32>
      %28 = arith.mulf %26, %27 : vector<1x4x1xf32>
      %29 = arith.mulf %23, %23 : vector<1x4x1xf32>
      %30 = arith.subf %28, %29 : vector<1x4x1xf32>
      %cst_15 = arith.constant 0.000000e+00 : f32
      %31 = vector.broadcast %cst_15 : f32 to vector<1x4x1xf32>
      %32 = arith.maximumf %30, %31 : vector<1x4x1xf32>
      %cst_16 = arith.constant 9.99999974E-6 : f32
      %33 = vector.broadcast %cst_16 : f32 to vector<2x4x1xf32>
      %34 = arith.addf %19, %33 : vector<2x4x1xf32>
      %35 = math.rsqrt %34 : vector<2x4x1xf32>
      %36 = vector.shape_cast %2 : vector<4x1xf32> to vector<1x4x1xf32>
      %37 = vector.broadcast %36 : vector<1x4x1xf32> to vector<2x4x1xf32>
      %38 = arith.mulf %37, %35 : vector<2x4x1xf32>
      %39 = arith.mulf %10, %38 : vector<2x4x1xf32>
      %40 = vector.shape_cast %3 : vector<4x1xf32> to vector<1x4x1xf32>
      %41 = vector.broadcast %40 : vector<1x4x1xf32> to vector<2x4x1xf32>
      %42 = arith.subf %41, %39 : vector<2x4x1xf32>
      %cst_17 = arith.constant 9.99999974E-6 : f32
      %43 = vector.broadcast %cst_17 : f32 to vector<1x4x1xf32>
      %44 = arith.addf %32, %43 : vector<1x4x1xf32>
      %45 = math.rsqrt %44 : vector<1x4x1xf32>
      %46 = vector.shape_cast %2 : vector<4x1xf32> to vector<1x4x1xf32>
      %47 = arith.mulf %46, %45 : vector<1x4x1xf32>
      %48 = arith.mulf %23, %47 : vector<1x4x1xf32>
      %49 = vector.shape_cast %3 : vector<4x1xf32> to vector<1x4x1xf32>
      %50 = arith.subf %49, %48 : vector<1x4x1xf32>
      %51 = tpu.iota {dimensions = array<i32: 1>} : vector<1x4x1xi32>
      %52 = vector.broadcast %1 : i32 to vector<1x4x1xi32>
      %53 = arith.addi %52, %51 : vector<1x4x1xi32>
      %c2_i32 = arith.constant 2 : i32
      %54 = vector.broadcast %c2_i32 : i32 to vector<1x4x1xi32>
      %55 = arith.cmpi slt, %53, %54 : vector<1x4x1xi32>
      %56 = vector.shape_cast %55 : vector<1x4x1xi1> to vector<1x4x1xi1>
      %57 = vector.broadcast %56 : vector<1x4x1xi1> to vector<2x4x1xi1>
      %58 = vector.shape_cast %47 : vector<1x4x1xf32> to vector<1x4x1xf32>
      %59 = vector.broadcast %58 : vector<1x4x1xf32> to vector<2x4x1xf32>
      %60 = arith.select %57, %38, %59 : vector<2x4x1xi1>, vector<2x4x1xf32>
      %61 = vector.shape_cast %55 : vector<1x4x1xi1> to vector<1x4x1xi1>
      %62 = vector.broadcast %61 : vector<1x4x1xi1> to vector<2x4x1xi1>
      %63 = vector.shape_cast %50 : vector<1x4x1xf32> to vector<1x4x1xf32>
      %64 = vector.broadcast %63 : vector<1x4x1xf32> to vector<2x4x1xf32>
      %65 = arith.select %62, %42, %64 : vector<2x4x1xi1>, vector<2x4x1xf32>
      %66 = vector.broadcast %60 : vector<2x4x1xf32> to vector<2x4x256xf32>
      %67 = arith.mulf %0, %66 : vector<2x4x256xf32>
      %68 = vector.broadcast %65 : vector<2x4x1xf32> to vector<2x4x256xf32>
      %69 = arith.addf %67, %68 : vector<2x4x256xf32>
      %c0_18 = arith.constant 0 : index
      %c0_19 = arith.constant 0 : index
      %c0_20 = arith.constant 0 : index
      %70 = vector.load %arg4[%c0_18, %c0_19, %c0_20] : memref<2x4x256xf32, #tpu.memory_space<vmem>>, vector<2x4x256xf32>
      tpu.vector_store %arg4[%c0_18, %c0_19, %c0_20], %69 {strides = array<i32>} : memref<2x4x256xf32, #tpu.memory_space<vmem>>, vector<2x4x256xf32>,
    } else {
    }
    return
  }
  func.func @transform_0(%arg0: i32) -> (i32, i32, i32) {
    %c0_i32 = arith.constant 0 : i32
    %c0_i32_0 = arith.constant 0 : i32
    %c0_i32_1 = arith.constant 0 : i32
    return %c0_i32, %arg0, %c0_i32_0 : i32, i32, i32
  }
  func.func @transform_1(%arg0: i32) -> (i32, i32) {
    %c0_i32 = arith.constant 0 : i32
    %c0_i32_0 = arith.constant 0 : i32
    %c0_i32_1 = arith.constant 0 : i32
    return %c0_i32, %c0_i32_0 : i32, i32
  }
  func.func @transform_2(%arg0: i32) -> (i32, i32) {
    %c0_i32 = arith.constant 0 : i32
    %c0_i32_0 = arith.constant 0 : i32
    %c0_i32_1 = arith.constant 0 : i32
    return %c0_i32, %c0_i32_0 : i32, i32
  }
  func.func @transform_3(%arg0: i32) -> (i32, i32, i32) {
    %c0_i32 = arith.constant 0 : i32
    %c0_i32_0 = arith.constant 0 : i32
    %c0_i32_1 = arith.constant 0 : i32
    return %c0_i32, %arg0, %c0_i32_0 : i32, i32, i32
  }
}

</mosaic_0001>

<bundles_post_ra>
// kernel: tpu_custom_call.1
= control target key start
LH: loop header
LB: loop body
LE: loop exit
PB: predicated region body
PF: predicated region fallthrough
CT: control target
= control target key end

     0   :  { %8 = vsyncpa [#allocation3], 0  ;;  %s325_s0 = inlined_call_operand.hbm [shape: f32[2,4,256], index: 0, kind: input, shape index: {}]   ;;  %s326_s1 = inlined_call_operand.vmem [shape: f32[4,1], index: 1, kind: input, shape index: {}]   ;;  %s327_s2 = inlined_call_operand.vmem [shape: f32[4,1], index: 2, kind: input, shape index: {}]   ;;  %s328_s3 = inlined_call_operand.hbm [shape: f32[2,4,256], index: 3, kind: output, shape index: {}]  }
   0x1   :  { %9 = vsyncpa [#allocation4], 0  ;;  %s253_s12 = smov [#allocation2]  }
   0x2   :  { %s15_s13 = sshll.u32 %s253_s12, 4  ;;  %s16_s13 = int_to_ptr.vmem [resolvable:$true] %s15_s13 }
   0x3   :  { %s217_s14 = scalar_lea.vmem %s16_s13, 256  ;;  %p222_p1 = scmp.lt.s32.totalorder %s16_s13, %s16_s13 }
   0x4   :  { %p218_p0 = scmp.ne.s32.totalorder %s16_s13, %s217_s14  ;;  %p223_p2 = scmp.lt.s32.totalorder %s217_s14, %s217_s14 }
   0x6   :  { %p224_p3 = por %p223_p2, %p222_p1 }
   0x8   :  { %p225_p4 = pnand %p224_p3, %p218_p0 }
   0xa   :  { %228 = shalt.err (!%p225_p4)
}
   0xb   :  { %s254_s15 = smov 128   ;;  %s255_s16 = smov 8  }
   0xc   :  { %21 = dma.hbm_to_vmem [thread:$0]  %s325_s0, 256, %s16_s13, [#allocation3], %s254_s15, %s254_s15, %s255_s16  }
   0xd   :  { %249 = dma.done.wait [#allocation3], 256  }
   0xe   :  { %250 = vsyncadd [#allocation3], 4294967040  ;;  %vm44_vm0 = vcmask 1043456   ;;  %v285_v0 = vld [vmem:[#allocation2] sm:$0xff]  ;;  %v287_v1 = vld [vmem:[#allocation2 + $0x8] sm:$0xff]  ;;  %v256_v24 = vmov 0   ;;  %v111_v49 = vlaneseq }
   0xf   :  { %v40_v2 = vcombine.high %v285_v0, %v285_v0  ;;  %v45_v3 = vsel %vm44_vm0, %v285_v0, 0.0  ;;  %v57_v4 = vmul.f32 %v285_v0, %v285_v0  ;;  %v41_v5 = vcombine.high %v287_v1, %v287_v1  ;;  %200 = vset.pattern.permute.xlu1 %v256_v24  ;;  %199 = vset.pattern.permute.xlu0 %v256_v24  ;;  %v32_v51 = vld [vmem:[%s326_s1] sm:$0xf]  ;;  %s258_s1 = smov [#allocation5]  }
  0x10   :  { %v50_v6 = vsel %vm44_vm0, %v287_v1, 0.0  ;;  %v58_v7 = vmul.f32 %v287_v1, %v287_v1  ;;  %v112_v52 = vshrl.u32 %v111_v49, 7  ;;  %v33_v59 = vld [vmem:[%s327_s2] sm:$0xf]  ;;  %s181_s2 = sshll.u32 %s258_s1, 4  ;;  %s182_s2 = int_to_ptr.vmem [resolvable:$true] %s181_s2 }
  0x11   :  { %v46_v8 = vsel %vm44_vm0, %v40_v2, 0.0  ;;  %v61_v9 = vcombine.high %v57_v4, %v57_v4  ;;  %v65_v10 = vsel %vm44_vm0, %v57_v4, 0.0  ;;  %v51_v11 = vsel %vm44_vm0, %v41_v5, 0.0  ;;  %s229_s22 = scalar_lea.vmem %s182_s2, 256  ;;  %p234_p6 = scmp.lt.s32.totalorder %s182_s2, %s182_s2 }
  0x12   :  { %v47_v12 = vadd.f32 %v46_v8, %v45_v3  ;;  %v62_v13 = vcombine.high %v58_v7, %v58_v7  ;;  %v70_v15 = vsel %vm44_vm0, %v58_v7, 0.0  ;;  %v52_v17 = vadd.f32 %v51_v11, %v50_v6  ;;  %p230_p5 = scmp.ne.s32.totalorder %s182_s2, %s229_s22  ;;  %p235_p7 = scmp.lt.s32.totalorder %s229_s22, %s229_s22 }
  0x13   :  { %v66_v14 = vsel %vm44_vm0, %v61_v9, 0.0  ;;  %vm115_vm1 = vcmp.lt.s32.totalorder %v112_v52, 2  ;;  %v257_v7 = vmov 839922192  }
  0x14   :  { %48 = vadd.xlane.f32.xlu0 %v47_v12  ;;  %v67_v16 = vadd.f32 %v66_v14, %v65_v10  ;;  %v83_v18 = vadd.f32 %v50_v6, %v47_v12  ;;  %v71_v19 = vsel %vm44_vm0, %v62_v13, 0.0  ;;  %v131_v8 = vunpack.c.l.s4 %v257_v7  ;;  %p236_p8 = por %p235_p7, %p234_p6 }
  0x15   :  { %v72_v22 = vadd.f32 %v71_v19, %v70_v15 }
  0x16   :  { %68 = vadd.xlane.f32.xlu1 %v67_v16  ;;  %v84_v20 = vadd.f32 %v83_v18, %v51_v11  ;;  %v88_v21 = vadd.f32 %v70_v15, %v67_v16  ;;  %v132_v9 = vunpack.c.0.s8 %v131_v8  ;;  %p237_p9 = pnand %p236_p8, %p230_p5 }
  0x18   :  { %53 = vadd.xlane.f32.xlu0 %v52_v17  ;;  %v89_v23 = vadd.f32 %v88_v21, %v71_v19  ;;  %v135_v10 = vsub.s32 %v132_v9, %v112_v52 }
  0x1a   :  { %85 = vadd.xlane.f32.xlu1 %v84_v20 }
  0x1c   :  { %73 = vadd.xlane.f32.xlu0 %v72_v22 }
  0x1e   :  { %90 = vadd.xlane.f32.xlu1 %v89_v23 }
  0x9d   :  { %v49_v25 = vpop.xlane.xlu0 %48 }
  0x9e   :  { %v55_v26 = vmul.f32 0.00390625, %v49_v25 }
  0x9f   :  { %v69_v27 = vpop.xlane.xlu1 %68 }
  0xa0   :  { %v77_v28 = vmul.f32 %v55_v26, %v55_v26  ;;  %v75_v29 = vmul.f32 0.00390625, %v69_v27 }
  0xa1   :  { %v54_v30 = vpop.xlane.xlu0 %53 }
  0xa2   :  { %v79_v31 = vsub.f32 %v75_v29, %v77_v28  ;;  %v56_v32 = vmul.f32 0.00390625, %v54_v30 }
  0xa3   :  { %v86_v33 = vpop.xlane.xlu1 %85 }
  0xa4   :  { %v81_v34 = vmax.f32 %v79_v31, 0.0  ;;  %v78_v35 = vmul.f32 %v56_v32, %v56_v32  ;;  %v87_v36 = vmul.f32 0.001953125, %v86_v33 }
  0xa5   :  { %v74_v37 = vpop.xlane.xlu0 %73 }
  0xa6   :  { %v96_v38 = vadd.f32 1e-05, %v81_v34  ;;  %v76_v39 = vmul.f32 0.00390625, %v74_v37  ;;  %v93_v41 = vmul.f32 %v87_v36, %v87_v36 }
  0xa7   :  { %v91_v40 = vpop.xlane.xlu1 %90 }
  0xa8   :  { %v80_v42 = vsub.f32 %v76_v39, %v78_v35  ;;  %v92_v43 = vmul.f32 0.001953125, %v91_v40  ;;  %203 = vrsqrt.f32 %v96_v38 }
  0xaa   :  { %v82_v44 = vmax.f32 %v80_v42, 0.0  ;;  %v94_v45 = vsub.f32 %v92_v43, %v93_v41 }
  0xac   :  { %v97_v46 = vadd.f32 1e-05, %v82_v44  ;;  %v95_v47 = vmax.f32 %v94_v45, 0.0 }
  0xae   :  { %205 = vrsqrt.f32 %v97_v46  ;;  %v106_v48 = vadd.f32 1e-05, %v95_v47 }
  0xb0   :  { %207 = vrsqrt.f32 %v106_v48 }
  0xb5   :  { %v204_v50 = vpop.eup %203 }
  0xb6   :  { %v100_v53 = vmul.f32 %v204_v50, %v32_v51 }
  0xb8   :  { %v102_v58 = vmul.f32 %v100_v53, %v55_v26 }
  0xba   :  { %v104_v63 = vsub.f32 %v33_v59, %v102_v58 }
  0xbb   :  { %v206_v54 = vpop.eup %205 }
  0xbc   :  { %v101_v56 = vmul.f32 %v206_v54, %v32_v51 }
  0xbd   :  { %v208_v55 = vpop.eup %207 }
  0xbe   :  { %v108_v57 = vmul.f32 %v208_v55, %v32_v51  ;;  %v103_v3 = vmul.f32 %v101_v56, %v56_v32 }
  0xc0   :  { %v119_v60 = vsel %vm115_vm1, %v101_v56, %v108_v57  ;;  %v118_v61 = vsel %vm115_vm1, %v100_v53, %v108_v57  ;;  %v109_v62 = vmul.f32 %v108_v57, %v87_v36  ;;  %v105_v5 = vsub.f32 %v33_v59, %v103_v3 }
  0xc1   :  { %128 = vperm.xlu1 %200, %v119_v60   ;;  %124 = vperm.xlu0 %199, %v118_v61  }
  0xc2   :  { %v110_v2 = vsub.f32 %v33_v59, %v109_v62 }
  0xc4   :  { %v120_v4 = vsel %vm115_vm1, %v104_v63, %v110_v2  ;;  %v121_v6 = vsel %vm115_vm1, %v105_v5, %v110_v2 }
  0xc5   :  { %150 = vperm.xlu1 %200, %v120_v4  }
  0xc9   :  { %154 = vperm.xlu1 %200, %v121_v6  }
 0x13c   :  { %v129_v11 = vpop.permute.xlu1 %128  ;;  %v125_v12 = vpop.permute.xlu0 %124 }
 0x13d   :  { %v136_v13 = vrot.slane %v125_v12, %v135_v10  ;;  %v143_v15 = vrot.slane %v129_v11, %v135_v10 }
 0x13f   :  { %v146_v16 = vmul.f32 %v136_v13, %v285_v0  ;;  %v147_v20 = vmul.f32 %v143_v15, %v287_v1 }
 0x140   :  { %v151_v14 = vpop.permute.xlu1 %150 }
 0x141   :  { %v162_v17 = vrot.slane %v151_v14, %v135_v10 }
 0x143   :  { %v172_v18 = vadd.f32 %v162_v17, %v146_v16 }
 0x144   :  { %v155_v19 = vpop.permute.xlu1 %154 }
 0x145   :  { %174 = vst [vmem:[#allocation5] sm:$0xff] %v172_v18  ;;  %v169_v21 = vrot.slane %v155_v19, %v135_v10 }
 0x147   :  { %v173_v22 = vadd.f32 %v169_v21, %v147_v20 }
 0x149   :  { %175 = vst [vmem:[#allocation5 + $0x8] sm:$0xff] %v173_v22 }
 0x14a   :  { %240 = shalt.err (!%p237_p9)
}
 0x14b   :  { %187 = dma.vmem_to_hbm [thread:$0]  %s182_s2, 256, %s328_s3, [#allocation4], %s254_s15, %s254_s15, %s255_s16  }
 0x14c   :  { %251 = dma.done.wait [#allocation4], 256  }
 0x14d   :  { %252 = vsyncadd [#allocation4], 4294967040 }
 0x14e   :  { %191 = vsyncpa [#allocation3], 1 }
 0x14f   :  { %192 = vsyncpa [#allocation4], 1 }

</bundles_post_ra>
